<compile_context>
chip_gen: v7x
topology: tpu7x:2x2x1
jax: 0.10.0
libtpu: 0.0.40
codegen_flags: <defaults>
</compile_context>

<pallas_src>
import functools

import jax
import jax.numpy as jnp
from jax.experimental import pallas as pl
from jax.experimental.pallas import tpu as pltpu


# ---------------------------------------------------------------------------
# Pallas kernel: fused time-augmented 3-layer MLP, feature-major layout.
#   x_ref  : [F_pad, TM]  bf16  (x rows + time rows + zero pad; batch on lanes)
#   w1     : [H, F_pad]   bf16
#   w2     : [H, H]       bf16
#   w3     : [Dout_pad,H] bf16
#   b1,b2  : [H, 1]       f32
#   b3     : [Dout_pad,1] f32
#   o_ref  : [Dout_pad, TM]
# ---------------------------------------------------------------------------
def vf_mlp_kernel(x_ref, w1_ref, b1_ref, w2_ref, b2_ref, w3_ref, b3_ref, o_ref):
    # Single merged layer-1 matmul (x + time features in one operand).
    h1 = (jnp.dot(w1_ref[...], x_ref[...], preferred_element_type=jnp.float32)
          + b1_ref[...])
    a1 = h1 * jax.nn.sigmoid(h1)                       # SiLU (f32)

    h2 = jnp.dot(w2_ref[...], a1.astype(jnp.bfloat16),
                 preferred_element_type=jnp.float32) + b2_ref[...]
    a2 = h2 * jax.nn.sigmoid(h2)                       # SiLU (f32)

    out = jnp.dot(w3_ref[...], a2.astype(jnp.bfloat16),
                  preferred_element_type=jnp.float32) + b3_ref[...]
    o_ref[...] = out.astype(o_ref.dtype)


def _round_up(n, m):
    return ((n + m - 1) // m) * m


@functools.partial(jax.jit, static_argnames=("stationary",))
def neural_network_forward(x, t, t2, params, stationary=False):
    """Mirror of NeuralNetwork.__call__ for model_type == Case.vector_field.

    x : [B, D]; t, t2 : per-sample time scalars ([B], [B,1] or scalar) or None.
    params : PyTorch-oriented (w1 [H, D+n_t], b1 [H], w2 [H,H], b2 [H],
             w3 [Dout, H], b3 [Dout]).
    """
    w1, b1, w2, b2, w3, b3 = params
    B, D = x.shape
    H = w1.shape[0]
    Dout = w3.shape[0]

    # ---- time features (equivalent of time_dependent_var concatenation) ----
    # TODO(synk): if a non-stationary checkpoint is called with t=t2=None the
    # extra W1 time columns are ignored (PyTorch would raise a shape error).
    time_vars = [] if stationary else [v for v in (t, t2) if v is not None]
    n_t = len(time_vars)
    F = D + n_t
    F_pad = _round_up(F, 8)                       # sublane-aligned input rows

    # ---- batch tiling: TM on the lane axis, multiple of 256, up to 4096 ----
    TM = min(4096, _round_up(B, 256))
    B_pad = _round_up(B, TM)
    steps = B_pad // TM
    if steps > 1 and steps % 2 == 1:              # even step count for v7x 2-TC
        steps += 1
        B_pad = steps * TM
    grid = (steps,)

    # ---- merged, lane-dense input tile [F_pad, B_pad] in bf16 ----
    rows = [jnp.transpose(x)]                                       # [D, B]
    if n_t:
        t_rows = jnp.stack(
            [jnp.broadcast_to(jnp.ravel(jnp.asarray(v)).astype(x.dtype), (B,))
             for v in time_vars], axis=0)                           # [n_t, B]
        rows.append(t_rows)
    inp = jnp.concatenate(rows, axis=0).astype(jnp.bfloat16)        # [F, B]
    inp = jnp.pad(inp, ((0, F_pad - F), (0, B_pad - B)))            # [F_pad, B_pad]

    # ---- weights: merged/padded W1, padded W3 (full-vreg output stores) ----
    Dout_pad = _round_up(Dout, 8)
    w1p = jnp.pad(w1[:, :F], ((0, 0), (0, F_pad - F))).astype(jnp.bfloat16)
    w2b = w2.astype(jnp.bfloat16)
    w3p = jnp.pad(w3, ((0, Dout_pad - Dout), (0, 0))).astype(jnp.bfloat16)
    b1c = b1.reshape(H, 1).astype(jnp.float32)
    b2c = b2.reshape(H, 1).astype(jnp.float32)
    b3c = jnp.pad(b3, (0, Dout_pad - Dout)).reshape(Dout_pad, 1).astype(jnp.float32)

    const = lambda i: (0, 0)              # weights/biases stay VMEM-resident
    out_fm = pl.pallas_call(
        vf_mlp_kernel,
        out_shape=jax.ShapeDtypeStruct((Dout_pad, B_pad), x.dtype),
        grid=grid,
        in_specs=[
            pl.BlockSpec((F_pad, TM), lambda i: (0, i)),
            pl.BlockSpec(w1p.shape, const),
            pl.BlockSpec(b1c.shape, const),
            pl.BlockSpec(w2b.shape, const),
            pl.BlockSpec(b2c.shape, const),
            pl.BlockSpec(w3p.shape, const),
            pl.BlockSpec(b3c.shape, const),
        ],
        out_specs=pl.BlockSpec((Dout_pad, TM), lambda i: (0, i)),
        compiler_params=pltpu.CompilerParams(
            dimension_semantics=("parallel",),        # megacore on v7x
            vmem_limit_bytes=32 * 1024 * 1024,        # safe on v5e/v6e/v7x
        ),
    )(inp, w1p, b1c, w2b, b2c, w3p, b3c)

    return jnp.transpose(out_fm[:Dout, :B])                         # [B, Dout]


# ---------------------------------------------------------------------------
# Deterministic parameter init (PyTorch nn.Linear style, [out, in] weights).
# ---------------------------------------------------------------------------
def init_params(key, dim_in, hidden, dim_out):
    def linear(k, fan_in, fan_out):
        kw, kb = jax.random.split(k)
        bound = 1.0 / (fan_in ** 0.5)
        w = jax.random.uniform(kw, (fan_out, fan_in), jnp.float32, -bound, bound)
        b = jax.random.uniform(kb, (fan_out,), jnp.float32, -bound, bound)
        return w, b

    k1, k2, k3 = jax.random.split(key, 3)
    w1, b1 = linear(k1, dim_in, hidden)
    w2, b2 = linear(k2, hidden, hidden)
    w3, b3 = linear(k3, hidden, dim_out)
    return (w1, b1, w2, b2, w3, b3)


if __name__ == "__main__":
    key = jax.random.PRNGKey(0)
    kx, kt, kt2, kp = jax.random.split(key, 4)

    B, dim_in, hidden, dim_out = 8, 4, 32, 4
    aug_dim_in = dim_in + 2       # vector_field + non-stationary: +1 per time var

    x = jax.random.normal(kx, (B, dim_in), jnp.float32)
    t = jax.random.uniform(kt, (B,), jnp.float32)
    t2 = jax.random.uniform(kt2, (B,), jnp.float32)

    params = init_params(kp, aug_dim_in, hidden, dim_out)

    out = neural_network_forward(x, t, t2, params, stationary=False)
    out = jax.block_until_ready(out)
    assert out.shape == (B, dim_out)

    # Pure-JAX reference of the same math (bf16 matmul operands, f32 accumulate).
    w1, b1, w2, b2, w3, b3 = params
    x_t = jnp.concatenate([x, t.reshape(-1, 1), t2.reshape(-1, 1)], axis=-1)
    bf = lambda a: a.astype(jnp.bfloat16).astype(jnp.float32)
    h = bf(x_t) @ bf(w1).T + b1
    h = h * jax.nn.sigmoid(h)
    h = bf(h) @ bf(w2).T + b2
    h = h * jax.nn.sigmoid(h)
    ref = bf(h) @ bf(w3).T + b3
    assert jnp.allclose(out, ref, atol=1e-3, rtol=1e-3), (
        float(jnp.max(jnp.abs(out - ref))))

    # TODO(synk): other model_type branches (NCSNpp, UNet, UNet1D, Transformer)
    # are full sub-networks whose definitions are not part of this module.
    print("KERNEL_OK")
</pallas_src>

<mosaic_0001>
module attributes {stable_mosaic.version = 11 : i64} {
  func.func @vf_mlp_kernel(%arg0: i32, %arg1: memref<8x256xbf16, #tpu.memory_space<vmem>>, %arg2: memref<32x8xbf16, #tpu.memory_space<vmem>>, %arg3: memref<32x1xf32, #tpu.memory_space<vmem>>, %arg4: memref<32x32xbf16, #tpu.memory_space<vmem>>, %arg5: memref<32x1xf32, #tpu.memory_space<vmem>>, %arg6: memref<8x32xbf16, #tpu.memory_space<vmem>>, %arg7: memref<8x1xf32, #tpu.memory_space<vmem>>, %arg8: memref<8x256xf32, #tpu.memory_space<vmem>>) attributes {dimension_semantics = [#tpu.dimension_semantics<parallel>], iteration_bounds = array<i64: 1>, scalar_prefetch = 0 : i64, scratch_operands = 0 : i64, tpu.core_type = #tpu.core_type<tc>, window_params = [{transform_indices = @transform_0, window_bounds = array<i64: 8, 256>}, {pipeline_mode = #tpu.pipeline_mode<synchronous>, transform_indices = @transform_1, window_bounds = array<i64: 32, 8>}, {pipeline_mode = #tpu.pipeline_mode<synchronous>, transform_indices = @transform_2, window_bounds = array<i64: 32, 1>}, {pipeline_mode = #tpu.pipeline_mode<synchronous>, transform_indices = @transform_3, window_bounds = array<i64: 32, 32>}, {pipeline_mode = #tpu.pipeline_mode<synchronous>, transform_indices = @transform_4, window_bounds = array<i64: 32, 1>}, {pipeline_mode = #tpu.pipeline_mode<synchronous>, transform_indices = @transform_5, window_bounds = array<i64: 8, 32>}, {pipeline_mode = #tpu.pipeline_mode<synchronous>, transform_indices = @transform_6, window_bounds = array<i64: 8, 1>}, {transform_indices = @transform_7, window_bounds = array<i64: 8, 256>}]} {
    %c0 = arith.constant 0 : index
    %c0_0 = arith.constant 0 : index
    %0 = vector.load %arg2[%c0, %c0_0] : memref<32x8xbf16, #tpu.memory_space<vmem>>, vector<32x8xbf16>
    %c0_1 = arith.constant 0 : index
    %c0_2 = arith.constant 0 : index
    %1 = vector.load %arg1[%c0_1, %c0_2] : memref<8x256xbf16, #tpu.memory_space<vmem>>, vector<8x256xbf16>
    %cst = arith.constant dense<0.000000e+00> : vector<32x256xf32>
    %2 = tpu.matmul %0, %1, %cst {dimension_numbers = #tpu.dot_dimension_numbers<[1], [0], [0], [1], [0, 0, 1, 1], [], []>} : vector<32x8xbf16>, vector<8x256xbf16>, vector<32x256xf32> -> vector<32x256xf32>
    %c0_3 = arith.constant 0 : index
    %c0_4 = arith.constant 0 : index
    %3 = vector.load %arg3[%c0_3, %c0_4] : memref<32x1xf32, #tpu.memory_space<vmem>>, vector<32x1xf32>
    %4 = vector.broadcast %3 : vector<32x1xf32> to vector<32x256xf32>
    %5 = arith.addf %2, %4 : vector<32x256xf32>
    %6 = arith.negf %5 : vector<32x256xf32>
    %7 = math.exp %6 : vector<32x256xf32>
    %cst_5 = arith.constant 1.000000e+00 : f32
    %8 = vector.broadcast %cst_5 : f32 to vector<32x256xf32>
    %9 = arith.addf %8, %7 : vector<32x256xf32>
    %10 = arith.divf %8, %9 : vector<32x256xf32>
    %11 = arith.mulf %5, %10 : vector<32x256xf32>
    %c0_6 = arith.constant 0 : index
    %c0_7 = arith.constant 0 : index
    %12 = vector.load %arg4[%c0_6, %c0_7] : memref<32x32xbf16, #tpu.memory_space<vmem>>, vector<32x32xbf16>
    %13 = arith.truncf %11 : vector<32x256xf32> to vector<32x256xbf16>
    %cst_8 = arith.constant dense<0.000000e+00> : vector<32x256xf32>
    %14 = tpu.matmul %12, %13, %cst_8 {dimension_numbers = #tpu.dot_dimension_numbers<[1], [0], [0], [1], [0, 0, 1, 1], [], []>} : vector<32x32xbf16>, vector<32x256xbf16>, vector<32x256xf32> -> vector<32x256xf32>
    %c0_9 = arith.constant 0 : index
    %c0_10 = arith.constant 0 : index
    %15 = vector.load %arg5[%c0_9, %c0_10] : memref<32x1xf32, #tpu.memory_space<vmem>>, vector<32x1xf32>
    %16 = vector.broadcast %15 : vector<32x1xf32> to vector<32x256xf32>
    %17 = arith.addf %14, %16 : vector<32x256xf32>
    %18 = arith.negf %17 : vector<32x256xf32>
    %19 = math.exp %18 : vector<32x256xf32>
    %cst_11 = arith.constant 1.000000e+00 : f32
    %20 = vector.broadcast %cst_11 : f32 to vector<32x256xf32>
    %21 = arith.addf %20, %19 : vector<32x256xf32>
    %22 = arith.divf %20, %21 : vector<32x256xf32>
    %23 = arith.mulf %17, %22 : vector<32x256xf32>
    %c0_12 = arith.constant 0 : index
    %c0_13 = arith.constant 0 : index
    %24 = vector.load %arg6[%c0_12, %c0_13] : memref<8x32xbf16, #tpu.memory_space<vmem>>, vector<8x32xbf16>
    %25 = arith.truncf %23 : vector<32x256xf32> to vector<32x256xbf16>
    %cst_14 = arith.constant dense<0.000000e+00> : vector<8x256xf32>
    %26 = tpu.matmul %24, %25, %cst_14 {dimension_numbers = #tpu.dot_dimension_numbers<[1], [0], [0], [1], [0, 0, 1, 1], [], []>} : vector<8x32xbf16>, vector<32x256xbf16>, vector<8x256xf32> -> vector<8x256xf32>
    %c0_15 = arith.constant 0 : index
    %c0_16 = arith.constant 0 : index
    %27 = vector.load %arg7[%c0_15, %c0_16] : memref<8x1xf32, #tpu.memory_space<vmem>>, vector<8x1xf32>
    %28 = vector.broadcast %27 : vector<8x1xf32> to vector<8x256xf32>
    %29 = arith.addf %26, %28 : vector<8x256xf32>
    %c0_17 = arith.constant 0 : index
    %c0_18 = arith.constant 0 : index
    %30 = vector.load %arg8[%c0_17, %c0_18] : memref<8x256xf32, #tpu.memory_space<vmem>>, vector<8x256xf32>
    tpu.vector_store %arg8[%c0_17, %c0_18], %29 {strides = array<i32>} : memref<8x256xf32, #tpu.memory_space<vmem>>, vector<8x256xf32>,
    return
  }
  func.func @transform_0(%arg0: i32) -> (i32, i32) {
    %c0_i32 = arith.constant 0 : i32
    %c0_i32_0 = arith.constant 0 : i32
    return %c0_i32, %arg0 : i32, i32
  }
  func.func @transform_1(%arg0: i32) -> (i32, i32) {
    %c0_i32 = arith.constant 0 : i32
    %c0_i32_0 = arith.constant 0 : i32
    %c0_i32_1 = arith.constant 0 : i32
    return %c0_i32, %c0_i32_0 : i32, i32
  }
  func.func @transform_2(%arg0: i32) -> (i32, i32) {
    %c0_i32 = arith.constant 0 : i32
    %c0_i32_0 = arith.constant 0 : i32
    %c0_i32_1 = arith.constant 0 : i32
    return %c0_i32, %c0_i32_0 : i32, i32
  }
  func.func @transform_3(%arg0: i32) -> (i32, i32) {
    %c0_i32 = arith.constant 0 : i32
    %c0_i32_0 = arith.constant 0 : i32
    %c0_i32_1 = arith.constant 0 : i32
    return %c0_i32, %c0_i32_0 : i32, i32
  }
  func.func @transform_4(%arg0: i32) -> (i32, i32) {
    %c0_i32 = arith.constant 0 : i32
    %c0_i32_0 = arith.constant 0 : i32
    %c0_i32_1 = arith.constant 0 : i32
    return %c0_i32, %c0_i32_0 : i32, i32
  }
  func.func @transform_5(%arg0: i32) -> (i32, i32) {
    %c0_i32 = arith.constant 0 : i32
    %c0_i32_0 = arith.constant 0 : i32
    %c0_i32_1 = arith.constant 0 : i32
    return %c0_i32, %c0_i32_0 : i32, i32
  }
  func.func @transform_6(%arg0: i32) -> (i32, i32) {
    %c0_i32 = arith.constant 0 : i32
    %c0_i32_0 = arith.constant 0 : i32
    %c0_i32_1 = arith.constant 0 : i32
    return %c0_i32, %c0_i32_0 : i32, i32
  }
  func.func @transform_7(%arg0: i32) -> (i32, i32) {
    %c0_i32 = arith.constant 0 : i32
    %c0_i32_0 = arith.constant 0 : i32
    return %c0_i32, %arg0 : i32, i32
  }
}

</mosaic_0001>

<bundles_post_ra>
// kernel: neural_network_forward.1
= control target key start
LH: loop header
LB: loop body
LE: loop exit
PB: predicated region body
PF: predicated region fallthrough
CT: control target
= control target key end

     0   :  { %vm78_vm0 = vcmask 1043456   ;;  %v514_v1 = vmov 0   ;;  %vm71_vm1 = vcmask 64512   ;;  %vm236_vm2 = vcmask 261120   ;;  %s618_s0 = inlined_call_operand.vmem [shape: bf16[8,256], index: 0, kind: input, shape index: {}]   ;;  %s619_s1 = inlined_call_operand.vmem [shape: bf16[32,8], index: 1, kind: input, shape index: {}]   ;;  %s620_s2 = inlined_call_operand.vmem [shape: f32[32,1], index: 2, kind: input, shape index: {}]   ;;  %s621_s4 = inlined_call_operand.vmem [shape: f32[32,1], index: 4, kind: input, shape index: {}]   ;;  %s622_s6 = inlined_call_operand.vmem [shape: f32[8,1], index: 6, kind: input, shape index: {}]   ;;  %s623_s3 = inlined_call_operand.vmem [shape: bf16[32,32], index: 3, kind: input, shape index: {}]   ;;  %s624_s5 = inlined_call_operand.vmem [shape: bf16[8,32], index: 5, kind: input, shape index: {}]   ;;  %s625_s7 = inlined_call_operand.vmem [shape: f32[8,256], index: 7, kind: output, shape index: {}]  }
   0x1   :  { %v31_v0 = vld [vmem:[%s618_s0] sm:$0xff]  ;;  %117 = vmatprep.mubr.bf16.mxu0 %v514_v1  ;;  %442 = vset.pattern.permute.xlu0 %v514_v1  ;;  %v34_v7 = vld [vmem:[%s620_s2 + $0x10] sm:$0xff]  ;;  %v33_v8 = vld [vmem:[%s620_s2 + $0x8] sm:$0xff] }
   0x2   :  { %v416_v2 = vcombine.high %v31_v0, %v31_v0  ;;  %v415_v3 = vcombine.low %v31_v0, %v31_v0  ;;  %443 = vset.pattern.permute.xlu1 %v514_v1  ;;  %275 = vmatprep.mubr.bf16.mxu1 %v514_v1  ;;  %v32_v4 = vld [vmem:[%s620_s2] sm:$0xff]  ;;  %v35_v9 = vld [vmem:[%s620_s2 + $0x18] sm:$0xff]  ;;  %v203_v11 = vld [vmem:[%s621_s4 + $0x8] sm:$0xff] }
   0x3   :  { %v446_v6 = vld [vmem:[%s619_s1] sm:$0xff]   ;;  %38 = vperm.xlu0 %442, %v32_v4   ;;  %48 = vperm.xlu1 %443, %v34_v7   ;;  %v447_v12 = vld [vmem:[%s619_s1 + $0x8] sm:$0xff]   ;;  %v204_v13 = vld [vmem:[%s621_s4 + $0x10] sm:$0xff] }
   0x4   :  { %417 = vmatprep.subr.msk.bf16.mxu0 %vm78_vm0, %v416_v2  ;;  %v80_v5 = vsel %vm78_vm0, %v415_v3, 0  ;;  %v202_v10 = vld [vmem:[%s621_s4] sm:$0xff]  ;;  %v205_v14 = vld [vmem:[%s621_s4 + $0x18] sm:$0xff] }
   0x5   :  { %86 = vmatpush1.bf16.msra.mxu0 %v80_v5  ;;  %v357_v15 = vld [vmem:[%s622_s6] sm:$0xff] }
   0x7   :  { %43 = vperm.xlu0 %442, %v33_v8   ;;  %53 = vperm.xlu1 %443, %v35_v9  }
   0x8   :  { %418 = vmatmul.mubr.msk.bf16.vlgmr.msra.gmra.mrb[0].mxu0 %vm71_vm1, %v446_v6 }
   0x9   :  { %127 = vmatprep.mubr.bf16.mxu0 %v514_v1 }
   0xb   :  { %208 = vperm.xlu0 %442, %v202_v10   ;;  %213 = vperm.xlu1 %443, %v203_v11  }
   0xf   :  { %218 = vperm.xlu0 %442, %v204_v13   ;;  %223 = vperm.xlu1 %443, %v205_v14  }
  0x10   :  { %419 = vmatmul.mubr.msk.bf16.gmra.mrb[4].mxu0 %vm71_vm1, %v447_v12 }
  0x11   :  { %398 = vmatprep.mubr.bf16.mxu0 %v514_v1 }
  0x13   :  { %360 = vperm.xlu0 %442, %v357_v15  }
  0x82   :  { %v39_v16 = vpop.permute.xlu0 %38  ;;  %v49_v26 = vpop.permute.xlu1 %48 }
  0x86   :  { %v44_v20 = vpop.permute.xlu0 %43  ;;  %v54_v34 = vpop.permute.xlu1 %53 }
  0xdb   :  { %v119_v17 = vpop.f32.mrb[0].mxu0 }
  0xdc   :  { %v120_v18 = vadd.f32 %v119_v17, %v39_v16  ;;  %v121_v19 = vpop.f32.mrb[1].mxu0  ;;  %v448_v17 = vld [vmem:[%s623_s3] sm:$0xff]  }
  0xdd   :  { %v122_v21 = vadd.f32 %v121_v19, %v39_v16  ;;  %v123_v22 = vpop.f32.mrb[2].mxu0  ;;  %v209_v19 = vpop.permute.xlu0 %208 }
  0xde   :  { %v420_v23 = vmul.f32 -1.442695, %v120_v18  ;;  %v124_v24 = vadd.f32 %v123_v22, %v44_v20  ;;  %v125_v25 = vpop.f32.mrb[3].mxu0 }
  0xdf   :  { %v421_v27 = vmul.f32 -1.442695, %v122_v21  ;;  %v126_v28 = vadd.f32 %v125_v25, %v44_v20 }
  0xe0   :  { %450 = vpow2.f32 %v420_v23  ;;  %v422_v29 = vmul.f32 -1.442695, %v124_v24  ;;  %v214_v23 = vpop.permute.xlu1 %213 }
  0xe1   :  { %452 = vpow2.f32 %v421_v27  ;;  %v423_v30 = vmul.f32 -1.442695, %v126_v28 }
  0xe2   :  { %454 = vpow2.f32 %v422_v29 }
  0xe3   :  { %456 = vpow2.f32 %v423_v30  ;;  %v129_v31 = vpop.f32.mrb[4].mxu0 }
  0xe4   :  { %v130_v32 = vadd.f32 %v129_v31, %v49_v26  ;;  %v131_v33 = vpop.f32.mrb[5].mxu0 }
  0xe5   :  { %v132_v35 = vadd.f32 %v131_v33, %v49_v26  ;;  %v133_v36 = vpop.f32.mrb[6].mxu0 }
  0xe6   :  { %v424_v37 = vmul.f32 -1.442695, %v130_v32  ;;  %v134_v38 = vadd.f32 %v133_v36, %v54_v34  ;;  %v135_v39 = vpop.f32.mrb[7].mxu0  ;;  %v224_v36 = vpop.permute.xlu1 %223 }
  0xe7   :  { %v425_v40 = vmul.f32 -1.442695, %v132_v35  ;;  %v136_v41 = vadd.f32 %v135_v39, %v54_v34 }
  0xe8   :  { %458 = vpow2.f32 %v424_v37  ;;  %v426_v42 = vmul.f32 -1.442695, %v134_v38 }
  0xe9   :  { %460 = vpow2.f32 %v425_v40  ;;  %v427_v43 = vmul.f32 -1.442695, %v136_v41 }
  0xea   :  { %v451_v44 = vpop.eup %450  ;;  %462 = vpow2.f32 %v426_v42 }
  0xeb   :  { %v453_v45 = vpop.eup %452  ;;  %v162_v46 = vadd.f32 1.0, %v451_v44  ;;  %464 = vpow2.f32 %v427_v43 }
  0xec   :  { %v455_v47 = vpop.eup %454  ;;  %v163_v48 = vadd.f32 1.0, %v453_v45 }
  0xed   :  { %v457_v49 = vpop.eup %456  ;;  %466 = vrcp.f32 %v162_v46  ;;  %v164_v50 = vadd.f32 1.0, %v455_v47 }
  0xee   :  { %468 = vrcp.f32 %v163_v48  ;;  %v165_v51 = vadd.f32 1.0, %v457_v49 }
  0xef   :  { %470 = vrcp.f32 %v164_v50 }
  0xf0   :  { %472 = vrcp.f32 %v165_v51 }
  0xf2   :  { %v459_v52 = vpop.eup %458 }
  0xf3   :  { %v461_v53 = vpop.eup %460  ;;  %v166_v54 = vadd.f32 1.0, %v459_v52 }
  0xf4   :  { %v463_v55 = vpop.eup %462  ;;  %v167_v56 = vadd.f32 1.0, %v461_v53 }
  0xf5   :  { %v465_v57 = vpop.eup %464  ;;  %474 = vrcp.f32 %v166_v54  ;;  %v168_v58 = vadd.f32 1.0, %v463_v55 }
  0xf6   :  { %476 = vrcp.f32 %v167_v56  ;;  %v169_v59 = vadd.f32 1.0, %v465_v57 }
  0xf7   :  { %v467_v60 = vpop.eup %466  ;;  %478 = vrcp.f32 %v168_v58 }
  0xf8   :  { %v469_v61 = vpop.eup %468  ;;  %480 = vrcp.f32 %v169_v59  ;;  %v186_v0 = vmul.f32 %v467_v60, %v120_v18  ;;  %v449_v18 = vld [vmem:[%s623_s3 + $0x8] sm:$0xff]  }
  0xf9   :  { %v471_v62 = vpop.eup %470  ;;  %v187_v3 = vmul.f32 %v469_v61, %v122_v21 }
  0xfa   :  { %v473_v63 = vpop.eup %472  ;;  %v188_v2 = vmul.f32 %v471_v62, %v124_v24 }
  0xfb   :  { %v189_v4 = vmul.f32 %v473_v63, %v126_v28 }
  0xfc   :  { %v198_v5 = vpack.c.bf16 %v188_v2, %v186_v0 }
  0xfd   :  { %v199_v6 = vpack.c.bf16 %v189_v4, %v187_v3 }
  0xff   :  { %v475_v7 = vpop.eup %474  ;;  %243 = vmatprep.subr.bf16.mxu1 %v199_v6 }
 0x100   :  { %v477_v8 = vpop.eup %476  ;;  %244 = vmatpush1.bf16.msra.mxu1 %v198_v5  ;;  %v190_v11 = vmul.f32 %v475_v7, %v130_v32  ;;  %v219_v32 = vpop.permute.xlu0 %218 }
 0x101   :  { %v479_v9 = vpop.eup %478  ;;  %v191_v13 = vmul.f32 %v477_v8, %v132_v35 }
 0x102   :  { %v481_v10 = vpop.eup %480  ;;  %v192_v12 = vmul.f32 %v479_v9, %v134_v38 }
 0x103   :  { %v193_v14 = vmul.f32 %v481_v10, %v136_v41 }
 0x104   :  { %v200_v15 = vpack.c.bf16 %v192_v12, %v190_v11 }
 0x105   :  { %v201_v16 = vpack.c.bf16 %v193_v14, %v191_v13 }
 0x107   :  { %245 = vmatprep.subr.bf16.mxu1 %v201_v16 }
 0x108   :  { %246 = vmatpush1.bf16.msra.mxu1 %v200_v15 }
 0x10b   :  { %430 = vmatmul.mubr.msk.bf16.vlgmr.msra.gmra.mrb[0].mxu1 %vm236_vm2, %v448_v17 }
 0x10c   :  { %285 = vmatprep.mubr.bf16.mxu1 %v514_v1 }
 0x113   :  { %431 = vmatmul.mubr.msk.bf16.gmra.mrb[4].mxu1 %vm236_vm2, %v449_v18 }
 0x1de   :  { %v277_v20 = vpop.f32.mrb[0].mxu1 }
 0x1df   :  { %v278_v21 = vadd.f32 %v277_v20, %v209_v19  ;;  %v279_v22 = vpop.f32.mrb[1].mxu1  ;;  %v361_v20 = vpop.permute.xlu0 %360 }
 0x1e0   :  { %v280_v24 = vadd.f32 %v279_v22, %v209_v19  ;;  %v281_v25 = vpop.f32.mrb[2].mxu1  ;;  %v352_v19 = vld [vmem:[%s624_s5] sm:$0xf] }
 0x1e1   :  { %v432_v26 = vmul.f32 -1.442695, %v278_v21  ;;  %v282_v27 = vadd.f32 %v281_v25, %v214_v23  ;;  %v283_v28 = vpop.f32.mrb[3].mxu1 }
 0x1e2   :  { %v433_v29 = vmul.f32 -1.442695, %v280_v24  ;;  %v284_v30 = vadd.f32 %v283_v28, %v214_v23 }
 0x1e3   :  { %482 = vpow2.f32 %v432_v26  ;;  %v434_v1 = vmul.f32 -1.442695, %v282_v27 }
 0x1e4   :  { %484 = vpow2.f32 %v433_v29  ;;  %v435_v31 = vmul.f32 -1.442695, %v284_v30 }
 0x1e5   :  { %486 = vpow2.f32 %v434_v1 }
 0x1e6   :  { %488 = vpow2.f32 %v435_v31  ;;  %v287_v33 = vpop.f32.mrb[4].mxu1 }
 0x1e7   :  { %v288_v34 = vadd.f32 %v287_v33, %v219_v32  ;;  %v289_v35 = vpop.f32.mrb[5].mxu1 }
 0x1e8   :  { %v290_v37 = vadd.f32 %v289_v35, %v219_v32  ;;  %v291_v38 = vpop.f32.mrb[6].mxu1 }
 0x1e9   :  { %v436_v39 = vmul.f32 -1.442695, %v288_v34  ;;  %v292_v40 = vadd.f32 %v291_v38, %v224_v36  ;;  %v293_v41 = vpop.f32.mrb[7].mxu1 }
 0x1ea   :  { %v437_v42 = vmul.f32 -1.442695, %v290_v37  ;;  %v294_v43 = vadd.f32 %v293_v41, %v224_v36 }
 0x1eb   :  { %490 = vpow2.f32 %v436_v39  ;;  %v438_v44 = vmul.f32 -1.442695, %v292_v40 }
 0x1ec   :  { %492 = vpow2.f32 %v437_v42  ;;  %v439_v45 = vmul.f32 -1.442695, %v294_v43 }
 0x1ed   :  { %v483_v46 = vpop.eup %482  ;;  %494 = vpow2.f32 %v438_v44 }
 0x1ee   :  { %v485_v47 = vpop.eup %484  ;;  %v320_v48 = vadd.f32 1.0, %v483_v46  ;;  %496 = vpow2.f32 %v439_v45 }
 0x1ef   :  { %v487_v49 = vpop.eup %486  ;;  %v321_v50 = vadd.f32 1.0, %v485_v47 }
 0x1f0   :  { %v489_v51 = vpop.eup %488  ;;  %498 = vrcp.f32 %v320_v48  ;;  %v322_v52 = vadd.f32 1.0, %v487_v49 }
 0x1f1   :  { %500 = vrcp.f32 %v321_v50  ;;  %v323_v53 = vadd.f32 1.0, %v489_v51 }
 0x1f2   :  { %502 = vrcp.f32 %v322_v52 }
 0x1f3   :  { %504 = vrcp.f32 %v323_v53 }
 0x1f5   :  { %v491_v54 = vpop.eup %490 }
 0x1f6   :  { %v493_v55 = vpop.eup %492  ;;  %v324_v56 = vadd.f32 1.0, %v491_v54 }
 0x1f7   :  { %v495_v57 = vpop.eup %494  ;;  %v325_v58 = vadd.f32 1.0, %v493_v55 }
 0x1f8   :  { %v497_v59 = vpop.eup %496  ;;  %506 = vrcp.f32 %v324_v56  ;;  %v326_v60 = vadd.f32 1.0, %v495_v57 }
 0x1f9   :  { %508 = vrcp.f32 %v325_v58  ;;  %v327_v61 = vadd.f32 1.0, %v497_v59 }
 0x1fa   :  { %v499_v62 = vpop.eup %498  ;;  %510 = vrcp.f32 %v326_v60 }
 0x1fb   :  { %v501_v63 = vpop.eup %500  ;;  %512 = vrcp.f32 %v327_v61  ;;  %v344_v3 = vmul.f32 %v499_v62, %v278_v21 }
 0x1fc   :  { %v503_v0 = vpop.eup %502  ;;  %v345_v5 = vmul.f32 %v501_v63, %v280_v24 }
 0x1fd   :  { %v505_v2 = vpop.eup %504  ;;  %v346_v4 = vmul.f32 %v503_v0, %v282_v27 }
 0x1fe   :  { %v347_v6 = vmul.f32 %v505_v2, %v284_v30 }
 0x1ff   :  { %v353_v7 = vpack.c.bf16 %v346_v4, %v344_v3 }
 0x200   :  { %v354_v8 = vpack.c.bf16 %v347_v6, %v345_v5 }
 0x202   :  { %v507_v9 = vpop.eup %506  ;;  %366 = vmatprep.subr.bf16.mxu0 %v354_v8 }
 0x203   :  { %v509_v10 = vpop.eup %508  ;;  %367 = vmatpush1.bf16.msra.mxu0 %v353_v7  ;;  %v348_v13 = vmul.f32 %v507_v9, %v288_v34 }
 0x204   :  { %v511_v11 = vpop.eup %510  ;;  %v349_v15 = vmul.f32 %v509_v10, %v290_v37 }
 0x205   :  { %v513_v12 = vpop.eup %512  ;;  %v350_v14 = vmul.f32 %v511_v11, %v292_v40 }
 0x206   :  { %v351_v16 = vmul.f32 %v513_v12, %v294_v43 }
 0x207   :  { %v355_v17 = vpack.c.bf16 %v350_v14, %v348_v13 }
 0x208   :  { %v356_v18 = vpack.c.bf16 %v351_v16, %v349_v15 }
 0x20a   :  { %368 = vmatprep.subr.bf16.mxu0 %v356_v18 }
 0x20b   :  { %369 = vmatpush1.bf16.msra.mxu0 %v355_v17 }
 0x20e   :  { %440 = vmatmul.mubr.msk.bf16.vlgmr.msra.gmra.mrb[8].mxu0 %vm236_vm2, %v352_v19 }
 0x2e1   :  { %v400_v21 = vpop.f32.mrb[8].mxu0 }
 0x2e2   :  { %v401_v22 = vadd.f32 %v400_v21, %v361_v20  ;;  %v402_v23 = vpop.f32.mrb[9].mxu0 }
 0x2e3   :  { %v403_v24 = vadd.f32 %v402_v23, %v361_v20  ;;  %v404_v25 = vpop.f32.mrb[10].mxu0 }
 0x2e4   :  { %407 = vst [vmem:[%s625_s7] sm:$0xff] %v401_v22  ;;  %v405_v26 = vpop.f32.mrb[11].mxu0 }
 0x2e5   :  { %408 = vst [vmem:[%s625_s7 + $0x8] sm:$0xff] %v403_v24 }

</bundles_post_ra>
